<compile_context>
chip_gen: v7x
topology: tpu7x:2x2x1
jax: 0.10.0
libtpu: 0.0.40
codegen_flags: <defaults>
</compile_context>

<pallas_src>
import functools
import math

import jax
import jax.numpy as jnp
import numpy as np
from jax.experimental import pallas as pl
from jax.experimental.pallas import tpu as pltpu


def _round_up(x: int, m: int) -> int:
    return ((x + m - 1) // m) * m


def _setconv_decoder_kernel(xt_ref, xgt_ref, zg_ref, inv_a_ref, inv_b_ref,
                            o_ref, acc_ref, *, inv_scale, use_bf16_matmul):
    """One (batch, nt-tile, ng-tile) grid step.

    xt_ref   : (1, tNT, DX)     target coordinates
    xgt_ref  : (1, DX, tNG)     transposed grid coordinates
    zg_ref   : (1, tNG, DZ)     grid features (zero rows beyond true NG)
    inv_a_ref: (NK, DX)         sqrt(0.5) / lengthscale (row per EQ kernel)
    inv_b_ref: (DX, NK)         sqrt(0.5) / lengthscale (column per EQ kernel)
    o_ref    : (1, tNT, NK*DZ)  output slab, k-major along the last dim
    acc_ref  : (tNT, NK*DZ)     f32 accumulator, resident across the NG axis
    """
    ng_id = pl.program_id(2)

    @pl.when(ng_id == 0)
    def _():
        acc_ref[...] = jnp.zeros_like(acc_ref)

    xt = xt_ref[0]           # (tNT, DX)
    xgt = xgt_ref[0]         # (DX, tNG)
    zg = zg_ref[0]           # (tNG, DZ)
    if use_bf16_matmul:
        zg = zg.astype(jnp.bfloat16)

    nk = inv_a_ref.shape[0]
    dx = xt.shape[-1]

    parts = []
    for k in range(nk):                                   # NK: small, static
        # Fold sqrt(0.5)/lengthscale into the *tiny* coordinate tensors
        # (negligible VPU work vs. the (tNT, tNG) tile ops below).
        xt_s = xt * inv_a_ref[k:k + 1, :]                 # (tNT, DX)
        xg_s = xgt * inv_b_ref[:, k:k + 1]                # (DX, tNG)

        # Direct squared distance over the tiny DX axis: no cancellation.
        dist2 = None
        for d in range(dx):                               # DX: small, static
            diff = xt_s[:, d:d + 1] - xg_s[d:d + 1, :]    # (tNT, tNG)
            sq = diff * diff
            dist2 = sq if dist2 is None else dist2 + sq

        w = jnp.exp(-dist2)                               # -0.5 folded into scales
        if use_bf16_matmul:
            w = w.astype(jnp.bfloat16)
        # EQ smoothing for kernel k on the MXU: (tNT, tNG) @ (tNG, DZ).
        parts.append(jnp.dot(w, zg, preferred_element_type=jnp.float32))

    update = parts[0] if nk == 1 else jnp.concatenate(parts, axis=-1)
    acc_ref[...] += update                                # lane-dense accumulate

    @pl.when(ng_id == pl.num_programs(2) - 1)
    def _():
        o_ref[0] = (acc_ref[...] * inv_scale).astype(o_ref.dtype)


def setconv_decoder(xt, x_grid, z_grid, lengthscale, scaling_factor=1.0, *,
                    tile_nt=256, tile_ng=512, use_bf16_matmul=False):
    """Pallas implementation of SetConvDecoder.forward.

    xt:          (B, NT, DX)
    x_grid:      (B, n1, ..., ndim, DX)
    z_grid:      (B, n1, ..., ndim, DZ)
    lengthscale: (DX, NK)
    returns:     (B, NT, DZ * NK)   ordered 'b nt (dz nk)'
    """
    B, NT, DX = xt.shape
    x_flat = x_grid.reshape(B, -1, x_grid.shape[-1])      # (B, NG, DX)
    z_flat = z_grid.reshape(B, -1, z_grid.shape[-1])      # (B, NG, DZ)
    NG, DZ = x_flat.shape[1], z_flat.shape[-1]
    NK = lengthscale.shape[-1]

    # sqrt(0.5)/lengthscale in both orientations: avoids any in-kernel
    # transpose or scalar extraction of the lengthscale table.
    inv = np.float32(np.sqrt(0.5)) / lengthscale.astype(jnp.float32)   # (DX, NK)
    inv_a = jnp.transpose(inv, (1, 0))                                 # (NK, DX)
    inv_b = inv                                                        # (DX, NK)

    # Conservative tile sizes that fit the 16/32 MiB scoped-VMEM defaults on
    # v5e/v6e/v7x (weights tile tNT*tNG*4B = 512 KiB at the defaults).
    t_nt = min(tile_nt, _round_up(NT, 8))
    t_ng = min(tile_ng, _round_up(NG, 128))
    nt_pad = _round_up(NT, t_nt)
    ng_pad = _round_up(NG, t_ng)

    # Zero-pad.  Padded grid points have z == 0, so whatever weight they get
    # contributes nothing to the smoothing sum; padded targets are sliced off.
    xt_p = jnp.pad(xt.astype(jnp.float32), ((0, 0), (0, nt_pad - NT), (0, 0)))
    xg_t = jnp.transpose(x_flat.astype(jnp.float32), (0, 2, 1))        # (B, DX, NG)
    xg_t = jnp.pad(xg_t, ((0, 0), (0, 0), (0, ng_pad - NG)))
    zg_p = jnp.pad(z_flat.astype(jnp.float32), ((0, 0), (0, ng_pad - NG), (0, 0)))

    grid = (B, nt_pad // t_nt, ng_pad // t_ng)

    kernel = functools.partial(
        _setconv_decoder_kernel,
        inv_scale=float(1.0 / scaling_factor),
        use_bf16_matmul=use_bf16_matmul)

    out = pl.pallas_call(
        kernel,
        out_shape=jax.ShapeDtypeStruct((B, nt_pad, NK * DZ), jnp.float32),
        grid_spec=pltpu.PrefetchScalarGridSpec(
            num_scalar_prefetch=0,
            grid=grid,
            in_specs=[
                pl.BlockSpec((1, t_nt, DX), lambda b, i, j: (b, i, 0)),  # xt
                pl.BlockSpec((1, DX, t_ng), lambda b, i, j: (b, 0, j)),  # x_grid^T
                pl.BlockSpec((1, t_ng, DZ), lambda b, i, j: (b, j, 0)),  # z_grid
                pl.BlockSpec((NK, DX), lambda b, i, j: (0, 0)),          # inv ls rows
                pl.BlockSpec((DX, NK), lambda b, i, j: (0, 0)),          # inv ls cols
            ],
            out_specs=pl.BlockSpec((1, t_nt, NK * DZ), lambda b, i, j: (b, i, 0)),
            scratch_shapes=[pltpu.VMEM((t_nt, NK * DZ), jnp.float32)],
        ),
        compiler_params=pltpu.CompilerParams(
            dimension_semantics=("parallel", "parallel", "arbitrary"),
            vmem_limit_bytes=48 * 1024 * 1024),
    )(xt_p, xg_t, zg_p, inv_a, inv_b)

    out = out[:, :NT, :]                                  # drop padded targets
    if NK > 1:
        # Kernel emits k-major 'b nt (nk dz)'; the module wants 'b nt (dz nk)'.
        # For the default NK == 1 this branch is skipped entirely.
        out = jnp.transpose(out.reshape(B, NT, NK, DZ), (0, 1, 3, 2))
        out = out.reshape(B, NT, NK * DZ)
    return out


def make_lengthscale(dim, num_kernels=1, init_lengthscale=0.1):
    """Deterministic replication of SetConvDecoder.__init__ / .lengthscale."""
    log_init = math.log10(init_lengthscale)
    init_ls = np.logspace(log_init - 0.5, log_init + 0.5,
                          num=num_kernels, dtype=np.float64)        # (nk,)
    init_ls = np.tile(init_ls[None, :], (dim, 1))                   # (dim, nk)
    lengthscale_param = np.log(np.exp(init_ls) - 1.0)               # inverse softplus
    return 1e-5 + jax.nn.softplus(
        jnp.asarray(lengthscale_param, dtype=jnp.float32))          # (dim, nk)


def reference_jax(xt, x_grid, z_grid, lengthscale, scaling_factor=1.0):
    """Pure-JAX reimplementation of the PyTorch forward (for verification)."""
    B = xt.shape[0]
    xg = x_grid.reshape(B, -1, x_grid.shape[-1])
    zg = z_grid.reshape(B, -1, z_grid.shape[-1])
    x1_ = xt[:, :, None, :, None]                  # (b, nt, 1, dx, 1)
    x2_ = xg[:, None, :, :, None]                  # (b, 1, ng, dx, 1)
    ls_ = lengthscale[None, None, None, :, :]      # (1, 1, 1, dx, nk)
    dist2 = jnp.sum(((x1_ - x2_) / ls_) ** 2, axis=-2)   # (b, nt, ng, nk)
    w = jnp.exp(-0.5 * dist2)
    w = jnp.transpose(w, (0, 3, 1, 2))             # (b, nk, nt, ng)
    z = jnp.einsum('bknG,bGd->bknd', w, zg,
                   precision=jax.lax.Precision.HIGHEST) / scaling_factor
    z = jnp.transpose(z, (0, 2, 3, 1)).reshape(B, xt.shape[1], -1)
    return z


if __name__ == "__main__":
    # Small shapes consistent with the module: DX=2 grid coords, 8x8 spatial
    # grid (NG=64), DZ=16 features, NT=16 targets, NK=2 EQ kernels.
    B, H, W, DX, DZ, NT, NK = 2, 8, 8, 2, 16, 16, 2
    scaling_factor = 2.0

    key = jax.random.PRNGKey(0)
    k1, k2, k3 = jax.random.split(key, 3)
    x_grid = jax.random.normal(k1, (B, H, W, DX), dtype=jnp.float32)
    z_grid = jax.random.normal(k2, (B, H, W, DZ), dtype=jnp.float32)
    xt = jax.random.normal(k3, (B, NT, DX), dtype=jnp.float32)

    lengthscale = make_lengthscale(dim=DX, num_kernels=NK, init_lengthscale=0.1)

    out = setconv_decoder(xt, x_grid, z_grid, lengthscale, scaling_factor)
    out = jax.block_until_ready(out)

    ref = reference_jax(xt, x_grid, z_grid, lengthscale, scaling_factor)
    ref = jax.block_until_ready(ref)

    assert out.shape == (B, NT, DZ * NK), out.shape
    # f32 kernel vs f32 reference; direct (cancellation-free) distance path
    # keeps the two within ~1e-5, so 1e-4 tolerances have ample margin.
    np.testing.assert_allclose(np.asarray(out), np.asarray(ref),
                               rtol=1e-4, atol=1e-4)
    print("KERNEL_OK")
</pallas_src>

<mosaic_0001>
module attributes {stable_mosaic.version = 11 : i64} {
  func.func @_setconv_decoder_kernel(%arg0: i32, %arg1: i32, %arg2: i32, %arg3: memref<1x16x2xf32, #tpu.memory_space<vmem>>, %arg4: memref<1x2x128xf32, #tpu.memory_space<vmem>>, %arg5: memref<1x128x16xf32, #tpu.memory_space<vmem>>, %arg6: memref<2x2xf32, #tpu.memory_space<vmem>>, %arg7: memref<2x2xf32, #tpu.memory_space<vmem>>, %arg8: memref<1x16x32xf32, #tpu.memory_space<vmem>>, %arg9: memref<16x32xf32, #tpu.memory_space<vmem>>) attributes {dimension_semantics = [#tpu.dimension_semantics<parallel>, #tpu.dimension_semantics<parallel>, #tpu.dimension_semantics<arbitrary>], iteration_bounds = array<i64: 2, 1, 1>, scalar_prefetch = 0 : i64, scratch_operands = 1 : i64, tpu.core_type = #tpu.core_type<tc>, window_params = [{transform_indices = @transform_0, window_bounds = array<i64: 1, 16, 2>}, {transform_indices = @transform_1, window_bounds = array<i64: 1, 2, 128>}, {transform_indices = @transform_2, window_bounds = array<i64: 1, 128, 16>}, {pipeline_mode = #tpu.pipeline_mode<synchronous>, transform_indices = @transform_3, window_bounds = array<i64: 2, 2>}, {pipeline_mode = #tpu.pipeline_mode<synchronous>, transform_indices = @transform_4, window_bounds = array<i64: 2, 2>}, {transform_indices = @transform_5, window_bounds = array<i64: 1, 16, 32>}]} {
    %c0_i32 = arith.constant 0 : i32
    %0 = arith.cmpi eq, %arg2, %c0_i32 : i32
    %1 = arith.extui %0 : i1 to i32
    %c0_i32_0 = arith.constant 0 : i32
    %2 = arith.cmpi ne, %1, %c0_i32_0 : i32
    scf.if %2 {
      %cst_25 = arith.constant 0.000000e+00 : f32
      %62 = vector.broadcast %cst_25 : f32 to vector<16x32xf32>
      %c0_26 = arith.constant 0 : index
      %c0_27 = arith.constant 0 : index
      %63 = vector.load %arg9[%c0_26, %c0_27] : memref<16x32xf32, #tpu.memory_space<vmem>>, vector<16x32xf32>
      tpu.vector_store %arg9[%c0_26, %c0_27], %62 {strides = array<i32>} : memref<16x32xf32, #tpu.memory_space<vmem>>, vector<16x32xf32>,
    } else {
    }
    %c0 = arith.constant 0 : index
    %c0_1 = arith.constant 0 : index
    %c0_2 = arith.constant 0 : index
    %3 = vector.load %arg3[%c0, %c0_1, %c0_2] : memref<1x16x2xf32, #tpu.memory_space<vmem>>, vector<1x16x2xf32>
    %4 = vector.shape_cast %3 : vector<1x16x2xf32> to vector<16x2xf32>
    %c0_3 = arith.constant 0 : index
    %c0_4 = arith.constant 0 : index
    %c0_5 = arith.constant 0 : index
    %5 = vector.load %arg4[%c0_3, %c0_4, %c0_5] : memref<1x2x128xf32, #tpu.memory_space<vmem>>, vector<1x2x128xf32>
    %6 = vector.shape_cast %5 : vector<1x2x128xf32> to vector<2x128xf32>
    %c0_6 = arith.constant 0 : index
    %c0_7 = arith.constant 0 : index
    %c0_8 = arith.constant 0 : index
    %7 = vector.load %arg5[%c0_6, %c0_7, %c0_8] : memref<1x128x16xf32, #tpu.memory_space<vmem>>, vector<1x128x16xf32>
    %8 = vector.shape_cast %7 : vector<1x128x16xf32> to vector<128x16xf32>
    %c0_9 = arith.constant 0 : index
    %c0_10 = arith.constant 0 : index
    %9 = vector.load %arg6[%c0_9, %c0_10] : memref<2x2xf32, #tpu.memory_space<vmem>>, vector<1x2xf32>
    %10 = vector.broadcast %9 : vector<1x2xf32> to vector<16x2xf32>
    %11 = arith.mulf %4, %10 : vector<16x2xf32>
    %c0_11 = arith.constant 0 : index
    %c0_12 = arith.constant 0 : index
    %12 = vector.load %arg7[%c0_11, %c0_12] : memref<2x2xf32, #tpu.memory_space<vmem>>, vector<2x1xf32>
    %13 = vector.broadcast %12 : vector<2x1xf32> to vector<2x128xf32>
    %14 = arith.mulf %6, %13 : vector<2x128xf32>
    %15 = vector.extract_strided_slice %11 {offsets = [0, 0], sizes = [16, 1], strides = [1, 1]} : vector<16x2xf32> to vector<16x1xf32>
    %16 = vector.extract_strided_slice %14 {offsets = [0, 0], sizes = [1, 128], strides = [1, 1]} : vector<2x128xf32> to vector<1x128xf32>
    %17 = vector.broadcast %15 : vector<16x1xf32> to vector<16x128xf32>
    %18 = vector.broadcast %16 : vector<1x128xf32> to vector<16x128xf32>
    %19 = arith.subf %17, %18 : vector<16x128xf32>
    %20 = arith.mulf %19, %19 : vector<16x128xf32>
    %21 = vector.extract_strided_slice %11 {offsets = [0, 1], sizes = [16, 1], strides = [1, 1]} : vector<16x2xf32> to vector<16x1xf32>
    %22 = vector.extract_strided_slice %14 {offsets = [1, 0], sizes = [1, 128], strides = [1, 1]} : vector<2x128xf32> to vector<1x128xf32>
    %23 = vector.broadcast %21 : vector<16x1xf32> to vector<16x128xf32>
    %24 = vector.broadcast %22 : vector<1x128xf32> to vector<16x128xf32>
    %25 = arith.subf %23, %24 : vector<16x128xf32>
    %26 = arith.mulf %25, %25 : vector<16x128xf32>
    %27 = arith.addf %20, %26 : vector<16x128xf32>
    %cst = arith.constant 0.000000e+00 : f32
    %28 = vector.broadcast %cst : f32 to vector<16x128xf32>
    %29 = arith.subf %28, %27 : vector<16x128xf32>
    %30 = math.exp %29 : vector<16x128xf32>
    %cst_13 = arith.constant dense<0.000000e+00> : vector<16x16xf32>
    %31 = tpu.matmul %30, %8, %cst_13 {dimension_numbers = #tpu.dot_dimension_numbers<[1], [0], [0], [1], [0, 0, 1, 1], [], []>} : vector<16x128xf32>, vector<128x16xf32>, vector<16x16xf32> -> vector<16x16xf32>
    %c1 = arith.constant 1 : index
    %c0_14 = arith.constant 0 : index
    %32 = vector.load %arg6[%c1, %c0_14] : memref<2x2xf32, #tpu.memory_space<vmem>>, vector<1x2xf32>
    %33 = vector.broadcast %32 : vector<1x2xf32> to vector<16x2xf32>
    %34 = arith.mulf %4, %33 : vector<16x2xf32>
    %c0_15 = arith.constant 0 : index
    %c1_16 = arith.constant 1 : index
    %35 = vector.load %arg7[%c0_15, %c1_16] : memref<2x2xf32, #tpu.memory_space<vmem>>, vector<2x1xf32>
    %36 = vector.broadcast %35 : vector<2x1xf32> to vector<2x128xf32>
    %37 = arith.mulf %6, %36 : vector<2x128xf32>
    %38 = vector.extract_strided_slice %34 {offsets = [0, 0], sizes = [16, 1], strides = [1, 1]} : vector<16x2xf32> to vector<16x1xf32>
    %39 = vector.extract_strided_slice %37 {offsets = [0, 0], sizes = [1, 128], strides = [1, 1]} : vector<2x128xf32> to vector<1x128xf32>
    %40 = vector.broadcast %38 : vector<16x1xf32> to vector<16x128xf32>
    %41 = vector.broadcast %39 : vector<1x128xf32> to vector<16x128xf32>
    %42 = arith.subf %40, %41 : vector<16x128xf32>
    %43 = arith.mulf %42, %42 : vector<16x128xf32>
    %44 = vector.extract_strided_slice %34 {offsets = [0, 1], sizes = [16, 1], strides = [1, 1]} : vector<16x2xf32> to vector<16x1xf32>
    %45 = vector.extract_strided_slice %37 {offsets = [1, 0], sizes = [1, 128], strides = [1, 1]} : vector<2x128xf32> to vector<1x128xf32>
    %46 = vector.broadcast %44 : vector<16x1xf32> to vector<16x128xf32>
    %47 = vector.broadcast %45 : vector<1x128xf32> to vector<16x128xf32>
    %48 = arith.subf %46, %47 : vector<16x128xf32>
    %49 = arith.mulf %48, %48 : vector<16x128xf32>
    %50 = arith.addf %43, %49 : vector<16x128xf32>
    %cst_17 = arith.constant 0.000000e+00 : f32
    %51 = vector.broadcast %cst_17 : f32 to vector<16x128xf32>
    %52 = arith.subf %51, %50 : vector<16x128xf32>
    %53 = math.exp %52 : vector<16x128xf32>
    %cst_18 = arith.constant dense<0.000000e+00> : vector<16x16xf32>
    %54 = tpu.matmul %53, %8, %cst_18 {dimension_numbers = #tpu.dot_dimension_numbers<[1], [0], [0], [1], [0, 0, 1, 1], [], []>} : vector<16x128xf32>, vector<128x16xf32>, vector<16x16xf32> -> vector<16x16xf32>
    %55 = tpu.concatenate %31, %54 in 1 : vector<16x16xf32>, vector<16x16xf32> -> vector<16x32xf32>
    %c0_19 = arith.constant 0 : index
    %c0_20 = arith.constant 0 : index
    %56 = vector.load %arg9[%c0_19, %c0_20] : memref<16x32xf32, #tpu.memory_space<vmem>>, vector<16x32xf32>
    %57 = arith.addf %56, %55 : vector<16x32xf32>
    %c0_21 = arith.constant 0 : index
    %c0_22 = arith.constant 0 : index
    %58 = vector.load %arg9[%c0_21, %c0_22] : memref<16x32xf32, #tpu.memory_space<vmem>>, vector<16x32xf32>
    tpu.vector_store %arg9[%c0_21, %c0_22], %57 {strides = array<i32>} : memref<16x32xf32, #tpu.memory_space<vmem>>, vector<16x32xf32>,
    %c0_i32_23 = arith.constant 0 : i32
    %59 = arith.cmpi eq, %arg2, %c0_i32_23 : i32
    %60 = arith.extui %59 : i1 to i32
    %c0_i32_24 = arith.constant 0 : i32
    %61 = arith.cmpi ne, %60, %c0_i32_24 : i32
    scf.if %61 {
      %c0_25 = arith.constant 0 : index
      %c0_26 = arith.constant 0 : index
      %62 = vector.load %arg9[%c0_25, %c0_26] : memref<16x32xf32, #tpu.memory_space<vmem>>, vector<16x32xf32>
      %cst_27 = arith.constant 5.000000e-01 : f32
      %63 = vector.broadcast %cst_27 : f32 to vector<16x32xf32>
      %64 = arith.mulf %62, %63 : vector<16x32xf32>
      %c0_28 = arith.constant 0 : index
      %c0_29 = arith.constant 0 : index
      %c0_30 = arith.constant 0 : index
      %65 = vector.load %arg8[%c0_28, %c0_29, %c0_30] : memref<1x16x32xf32, #tpu.memory_space<vmem>>, vector<1x16x32xf32>
      %66 = vector.shape_cast %65 : vector<1x16x32xf32> to vector<16x32xf32>
      %67 = vector.shape_cast %64 : vector<16x32xf32> to vector<1x16x32xf32>
      tpu.vector_store %arg8[%c0_28, %c0_29, %c0_30], %67 {strides = array<i32>} : memref<1x16x32xf32, #tpu.memory_space<vmem>>, vector<1x16x32xf32>,
    } else {
    }
    return
  }
  func.func @transform_0(%arg0: i32, %arg1: i32, %arg2: i32) -> (i32, i32, i32) {
    %c0_i32 = arith.constant 0 : i32
    %c0_i32_0 = arith.constant 0 : i32
    return %arg0, %arg1, %c0_i32 : i32, i32, i32
  }
  func.func @transform_1(%arg0: i32, %arg1: i32, %arg2: i32) -> (i32, i32, i32) {
    %c0_i32 = arith.constant 0 : i32
    %c0_i32_0 = arith.constant 0 : i32
    return %arg0, %c0_i32, %arg2 : i32, i32, i32
  }
  func.func @transform_2(%arg0: i32, %arg1: i32, %arg2: i32) -> (i32, i32, i32) {
    %c0_i32 = arith.constant 0 : i32
    %c0_i32_0 = arith.constant 0 : i32
    return %arg0, %arg2, %c0_i32 : i32, i32, i32
  }
  func.func @transform_3(%arg0: i32, %arg1: i32, %arg2: i32) -> (i32, i32) {
    %c0_i32 = arith.constant 0 : i32
    %c0_i32_0 = arith.constant 0 : i32
    %c0_i32_1 = arith.constant 0 : i32
    return %c0_i32, %c0_i32_0 : i32, i32
  }
  func.func @transform_4(%arg0: i32, %arg1: i32, %arg2: i32) -> (i32, i32) {
    %c0_i32 = arith.constant 0 : i32
    %c0_i32_0 = arith.constant 0 : i32
    %c0_i32_1 = arith.constant 0 : i32
    return %c0_i32, %c0_i32_0 : i32, i32
  }
  func.func @transform_5(%arg0: i32, %arg1: i32, %arg2: i32) -> (i32, i32, i32) {
    %c0_i32 = arith.constant 0 : i32
    %c0_i32_0 = arith.constant 0 : i32
    return %arg0, %arg1, %c0_i32 : i32, i32, i32
  }
}

</mosaic_0001>

<bundles_post_ra>
// kernel: tpu_custom_call.1
= control target key start
LH: loop header
LB: loop body
LE: loop exit
PB: predicated region body
PF: predicated region fallthrough
CT: control target
= control target key end

     0   :  { %10 = vsyncpa [#allocation4], 0  ;;  %s1318_s0 = inlined_call_operand.vmem [shape: f32[2,16,2], index: 0, kind: input, shape index: {}]   ;;  %s1319_s1 = inlined_call_operand.vmem [shape: f32[2,2,128], index: 1, kind: input, shape index: {}]   ;;  %s1320_s2 = inlined_call_operand.vmem [shape: f32[2,128,16], index: 2, kind: input, shape index: {}]   ;;  %s1321_s3 = inlined_call_operand.vmem [shape: f32[2,2], index: 3, kind: input, shape index: {}]   ;;  %s1322_s4 = inlined_call_operand.vmem [shape: f32[2,2], index: 4, kind: input, shape index: {}]   ;;  %s1323_s5 = inlined_call_operand.hbm [shape: f32[2,16,32], index: 5, kind: output, shape index: {}]  }
   0x1   :  { %12 = vsyncpa [#allocation4 + $0x1], 0  ;;  %s1154_s18 = smov 0   ;;  %s1156_s19 = smov 0  }
   0x2   :  { %s1158_s20 = smov 0   ;;  %s1160_s21 = smov 0  }
   0x3   :  { %s1162_s22 = smov 0   ;;  %s1164_s23 = smov 0  }
   0x4 LB: > { %s769_s24 = sadd.s32 4294967295, %s1115_s23   ;;  %s770_s25 = sadd.s32 4294967294, %s1115_s23   ;;  %s1115_s23 = sphi %s1164_s23, %s18_s23   ;;  %s1111_s22 = sphi %s1162_s22, %s1330_s22   ;;  %s1107_s21 = sphi %s1160_s21, %s1329_s21   ;;  %s1103_s20 = sphi %s1158_s20, %s1328_s20   ;;  %s1099_s19 = sphi %s1156_s19, %s1327_s19   ;;  %s1095_s18 = sphi %s1154_s18, %s1326_s18  }
   0x5   : > { %s37_s26 = sadd.s32 1, %s1111_s22  ;;  %s172_s27 = sadd.s32 1, %s1103_s20 }
   0x6   : > { %p39_p0 = scmp.ge.s32.totalorder %s37_s26, 2  ;;  %p182_p1 = scmp.ne.s32.totalorder %s1103_s20, %s1099_s19 }
   0x7   : > { %p183_p2 = scmp.eq.s32.totalorder %s769_s24, 1  ;;  %p188_p3 = scmp.ne.s32.totalorder %s1099_s19, %s1095_s18 }
   0x8   : > { %s1332_s26 = smov (%p39_p0, %s37_s26), 0  ;;  %p189_p5 = scmp.eq.s32.totalorder %s770_s25, 1 }
   0x9   : > { %p1194_p4 = por %p183_p2, %p182_p1  ;;  %s167_s29 = ssub.s32 %s1111_s22, %s1332_s26 }
   0xa   : > { %p773_p6 = scmp.ge.s32.totalorder %s1115_s23, 1  ;;  %p170_p7 = scmp.eq.s32.totalorder %s167_s29, 0 }
   0xb   : > { %p1201_p8 = por %p189_p5, %p188_p3  ;;  %p249_p9 = scmp.lt.s32.totalorder %s1115_s23, 3 }
   0xc   : > { %s1207_s6 = scalar_select %p170_p7, %s1103_s20, %s172_s27  }
   0xd   : > { %p250_p10 = pnand %p773_p6, %p249_p9 }
   0xe   : > { %v358_v0 = vld [vmem:[%s1322_s4] sm:$0x3] (!%p250_p10)  ;;  %p298_p11 = scmp.lt.s32.totalorder (!%p250_p10), %s1107_s21, 1  ;;  %v1117_v1 = vmov (!%p250_p10), 1   ;;  %v1118_v3 = vmov (!%p250_p10), 0   ;;  %v375_v35 = vlaneseq (!%p250_p10)  ;;  %vm329_vm0 = vcmask (!%p250_p10), 261120  }
   0xf   : > { %253 = sbr.rel (%p250_p10) target bundleno = 544 (0x220), region = 40  ;;  %1021 = vset.pattern.permute.xlu0 (!%p250_p10), %v1117_v1  ;;  %1023 = vset.pattern.permute.xlu1 (!%p250_p10), %v1117_v1  ;;  %v781_v2 = vld [vmem:[%s1321_s3 + $0x1] ss:$0 sm:$0xff] (!%p250_p10)  ;;  %v780_v14 = vld [vmem:[%s1321_s3] ss:$0 sm:$0xff] (!%p250_p10)  ;;  %vm619_vm1 = vcmask (!%p250_p10), 130048  }
  0x10   : > { %490 = vperm.xlu0 (!%p250_p10), %1021, %v358_v0   ;;  %v376_v36 = vshrl.u32 (!%p250_p10), %v375_v35, 7  ;;  %s294_s12 = sand.u32 (!%p250_p10), 1, %s1099_s19   ;;  %s789_s14 = sshll.u32 (!%p250_p10), %s1107_s21, 8 }
  0x11   : > { %s774_s13 = sshll.u32 (!%p250_p10), %s294_s12, 4  ;;  %s1121_s29 = smov (!%p250_p10), [#allocation3]  }
  0x12   : > { %v393_v39 = vsub.s32 (!%p250_p10), 1, %v376_v36  ;;  %v377_v40 = vsub.s32 (!%p250_p10), 0, %v376_v36  ;;  %s296_s15 = scalar_lea.vmem (!%p250_p10), [#allocation3], %s774_s13 }
  0x14   : > { %1022 = vset.pattern.permute.xlu0 (!%p250_p10), %v1118_v3 }
  0x16   : > { %s1216_s9 = scalar_select %p298_p11, %s1107_s21, 1 }
  0x17   : > { %s1272_s21 = scalar_lea.sflag [#allocation4], %s294_s12 }
  0x18   : > { %s787_s10 = sshll.u32 %s1216_s9, 4  ;;  %s788_s11 = sshll.u32 %s1216_s9, 7 }
  0x19   : > { %s305_s16 = scalar_lea.vmem %s1318_s0, %s787_s10  ;;  %s1229_s25 = scalar_lea.vmem %s1320_s2, %s788_s11 }
  0x1a   : > { %v332_v4 = vld [vmem:[%s305_s16] sm:$0xff]  ;;  %v333_v6 = vld [vmem:[%s305_s16 + $0x8] sm:$0xff]  ;;  %v337_v10 = vld [vmem:[%s1229_s25 + $0x10] sm:$0xff]  ;;  %s777_s7 = sshll.u32 %s1216_s9, 1  ;;  %s1120_s9 = smov 16  }
  0x1b   : > { %v335_v5 = vld [vmem:[%s1229_s25] sm:$0xff]  ;;  %v487_v7 = vmul.f32 %v781_v2, %v332_v4  ;;  %v336_v8 = vld [vmem:[%s1229_s25 + $0x8] sm:$0xff]  ;;  %v338_v11 = vld [vmem:[%s1229_s25 + $0x18] sm:$0xff]  ;;  %v488_v12 = vmul.f32 %v781_v2, %v333_v6  ;;  %v356_v17 = vmul.f32 %v780_v14, %v332_v4  ;;  %v357_v25 = vmul.f32 %v780_v14, %v333_v6  ;;  %s313_s11 = scalar_lea.vmem %s1319_s1, %s777_s7  ;;  %s654_s16 = sshll.u32 %s296_s15, 4  ;;  %s1268_s16 = int_to_ptr.vmem [resolvable:$true] %s654_s16 }
  0x1c   : > { %v896_v9 = vpack.c.bf16 %v336_v8, %v335_v5  ;;  %v900_v13 = vpack.c.bf16 %v338_v11, %v337_v10  ;;  %v339_v15 = vld [vmem:[%s1229_s25 + $0x20] sm:$0xff]  ;;  %v340_v16 = vld [vmem:[%s1229_s25 + $0x28] sm:$0xff]  ;;  %v341_v19 = vld [vmem:[%s1229_s25 + $0x30] sm:$0xff]  ;;  %s1037_s27 = scalar_lea.vmem %s1268_s16, 256  ;;  %s1041_s7 = sshll.u32 %s1121_s29, 4  ;;  %s1042_s7 = int_to_ptr.vmem [resolvable:$false] %s1041_s7 }
  0x1d   : > { %513 = vperm.xlu1 %1023, %v487_v7   ;;  %496 = vperm.xlu0 %1022, %v487_v7   ;;  %v904_v18 = vpack.c.bf16 %v340_v16, %v339_v15  ;;  %v342_v20 = vld [vmem:[%s1229_s25 + $0x38] sm:$0xff]  ;;  %v343_v22 = vld [vmem:[%s1229_s25 + $0x40] sm:$0xff]  ;;  %v344_v23 = vld [vmem:[%s1229_s25 + $0x48] sm:$0xff]  ;;  %p1038_p12 = scmp.ne.s32.totalorder %s1268_s16, %s1037_s27  ;;  %s1043_s8 = scalar_lea.vmem %s1042_s7, 512 }
  0x1e   : > { %929 = vmatprep.subr.bf16.mxu1 %v896_v9  ;;  %897 = vmatprep.subr.bf16.mxu0 %v896_v9  ;;  %v908_v21 = vpack.c.bf16 %v342_v20, %v341_v19  ;;  %v912_v24 = vpack.c.bf16 %v344_v23, %v343_v22  ;;  %v345_v26 = vld [vmem:[%s1229_s25 + $0x50] sm:$0xff]  ;;  %v346_v27 = vld [vmem:[%s1229_s25 + $0x58] sm:$0xff]  ;;  %v347_v29 = vld [vmem:[%s1229_s25 + $0x60] sm:$0xff]  ;;  %p1044_p1 = scmp.lt.s32.totalorder %s1268_s16, %s1042_s7  ;;  %p1045_p2 = scmp.lt.s32.totalorder %s1043_s8, %s1037_s27 }
  0x1f   : > { %931 = vmatpush3.bf16.msra.mxu1 %v896_v9  ;;  %899 = vmatpush3.bf16.msra.mxu0 %v896_v9  ;;  %v916_v28 = vpack.c.bf16 %v346_v27, %v345_v26  ;;  %v348_v30 = vld [vmem:[%s1229_s25 + $0x68] sm:$0xff]  ;;  %v349_v32 = vld [vmem:[%s1229_s25 + $0x70] sm:$0xff]  ;;  %v350_v33 = vld [vmem:[%s1229_s25 + $0x78] sm:$0xff]  ;;  %s1266_s25 = scalar_lea.hbm %s1323_s5, %s789_s14  ;;  %p1039_p13 = pnand %p1038_p12, %p1194_p4 }
  0x20   : > { %933 = vmatprep.subr.bf16.mxu1 %v900_v13  ;;  %901 = vmatprep.subr.bf16.mxu0 %v900_v13  ;;  %v920_v31 = vpack.c.bf16 %v348_v30, %v347_v29  ;;  %v924_v34 = vpack.c.bf16 %v350_v33, %v349_v32  ;;  %v334_v37 = vld [vmem:[%s313_s11] sm:$0x3]  ;;  %p1046_p3 = por %p1045_p2, %p1044_p1 }
  0x21   : > { %1024 = vset.pattern.permute.xlu1 %v1118_v3  ;;  %361 = vperm.xlu0 %1022, %v358_v0   ;;  %p1040_p0 = pneg %p1039_p13 }
  0x22   : > { %501 = vperm.xlu1 %1024, %v488_v12  }
  0x23   : > { %935 = vmatpush3.bf16.msra.mxu1 %v900_v13  ;;  %903 = vmatpush3.bf16.msra.mxu0 %v900_v13  ;;  %p1047_p5 = pnand %p1046_p3, %p1040_p0 }
  0x24   : > { %937 = vmatprep.subr.bf16.mxu1 %v904_v18  ;;  %905 = vmatprep.subr.bf16.mxu0 %v904_v18 }
  0x25   : > { %1027 = vset.pattern.permute.xlu0 %v1117_v1 }
  0x26   : > { %1025 = vset.pattern.permute.xlu1 %v1117_v1  ;;  %384 = vperm.xlu0 %1027, %v356_v17  }
  0x27   : > { %517 = vperm.xlu1 %1025, %v488_v12   ;;  %939 = vmatpush3.bf16.msra.mxu1 %v904_v18 }
  0x28   : > { %941 = vmatprep.subr.bf16.mxu1 %v908_v21  ;;  %907 = vmatpush3.bf16.msra.mxu0 %v904_v18 }
  0x29   : > { %909 = vmatprep.subr.bf16.mxu0 %v908_v21 }
  0x2b   : > { %1026 = vset.pattern.permute.xlu1 %v1118_v3  ;;  %943 = vmatpush3.bf16.msra.mxu1 %v908_v21 }
  0x2c   : > { %367 = vperm.xlu1 %1026, %v356_v17   ;;  %945 = vmatprep.subr.bf16.mxu1 %v912_v24 }
  0x2d   : > { %911 = vmatpush3.bf16.msra.mxu0 %v908_v21 }
  0x2e   : > { %913 = vmatprep.subr.bf16.mxu0 %v912_v24 }
  0x2f   : > { %947 = vmatpush3.bf16.msra.mxu1 %v912_v24 }
  0x30   : > { %372 = vperm.xlu1 %1026, %v357_v25   ;;  %949 = vmatprep.subr.bf16.mxu1 %v916_v28 }
  0x31   : > { %915 = vmatpush3.bf16.msra.mxu0 %v912_v24  ;;  %v1119_v24 = vmov 0.0  }
  0x32   : > { %917 = vmatprep.subr.bf16.mxu0 %v916_v28  ;;  %331 = vst.msk [vmem:[#allocation2 + $0x8] sm:$0xff] %vm329_vm0, %v1119_v24  ;;  %330 = vst.msk [vmem:[#allocation2] sm:$0xff] %vm329_vm0, %v1119_v24 }
  0x33   : > { %951 = vmatpush3.bf16.msra.mxu1 %v916_v28 }
  0x34   : > { %1028 = vset.pattern.permute.xlu1 %v1117_v1  ;;  %953 = vmatprep.subr.bf16.mxu1 %v920_v31 }
  0x35   : > { %388 = vperm.xlu1 %1028, %v357_v25   ;;  %919 = vmatpush3.bf16.msra.mxu0 %v916_v28 }
  0x36   : > { %921 = vmatprep.subr.bf16.mxu0 %v920_v31 }
  0x37   : > { %955 = vmatpush3.bf16.msra.mxu1 %v920_v31 }
  0x38   : > { %957 = vmatprep.subr.bf16.mxu1 %v924_v34 }
  0x39   : > { %923 = vmatpush3.bf16.msra.mxu0 %v920_v31  ;;  %v623_v29 = vld [vmem:[#allocation2 + $0x8] sm:$0xff]  ;;  %v622_v31 = vld [vmem:[#allocation2] sm:$0xff] }
  0x3a   : > { %925 = vmatprep.subr.bf16.mxu0 %v924_v34 }
  0x3b   : > { %959 = vmatpush3.bf16.msra.mxu1 %v924_v34 }
  0x3d   : > { %927 = vmatpush3.bf16.msra.mxu0 %v924_v34 }
  0x8f   : > { %v491_v38 = vpop.permute.xlu0 %490 }
  0x90   : > { %v493_v41 = vmul.f32 %v491_v38, %v334_v37 }
  0x92   : > { %v523_v42 = vrot.slane %v493_v41, %v393_v39  ;;  %v507_v43 = vrot.slane %v493_v41, %v377_v40 }
  0x9c   : > { %v514_v44 = vpop.permute.xlu1 %513  ;;  %v497_v45 = vpop.permute.xlu0 %496 }
  0x9d   : > { %v524_v46 = vsub.f32 %v514_v44, %v523_v42  ;;  %v508_v47 = vsub.f32 %v497_v45, %v507_v43 }
  0x9f   : > { %v526_v48 = vmul.f32 %v524_v46, %v524_v46  ;;  %v510_v49 = vmul.f32 %v508_v47, %v508_v47 }
  0xa0   : > { %v362_v50 = vpop.permute.xlu0 %361 }
  0xa1   : > { %v528_v51 = vadd.f32 %v526_v48, %v510_v49  ;;  %v502_v52 = vpop.permute.xlu1 %501  ;;  %v364_v53 = vmul.f32 %v362_v50, %v334_v37 }
  0xa2   : > { %v509_v55 = vsub.f32 %v502_v52, %v507_v43 }
  0xa3   : > { %v530_v54 = vsub.f32 0.0, %v528_v51  ;;  %v394_v58 = vrot.slane %v364_v53, %v393_v39  ;;  %v378_v0 = vrot.slane %v364_v53, %v377_v40 }
  0xa4   : > { %v511_v61 = vmul.f32 %v509_v55, %v509_v55 }
  0xa5   : > { %v532_v56 = vmul.f32 1.442695, %v530_v54  ;;  %v385_v60 = vpop.permute.xlu0 %384 }
  0xa6   : > { %v518_v57 = vpop.permute.xlu1 %517  ;;  %v395_v63 = vsub.f32 %v385_v60, %v394_v58 }
  0xa7   : > { %v525_v59 = vsub.f32 %v518_v57, %v523_v42  ;;  %1029 = vpow2.f32 %v532_v56 }
  0xa8   : > { %v397_v5 = vmul.f32 %v395_v63, %v395_v63 }
  0xa9   : > { %v527_v62 = vmul.f32 %v525_v59, %v525_v59 }
  0xab   : > { %v529_v1 = vadd.f32 %v527_v62, %v511_v61  ;;  %v368_v2 = vpop.permute.xlu1 %367 }
  0xac   : > { %v379_v3 = vsub.f32 %v368_v2, %v378_v0 }
  0xad   : > { %v531_v4 = vsub.f32 0.0, %v529_v1 }
  0xae   : > { %v381_v6 = vmul.f32 %v379_v3, %v379_v3 }
  0xaf   : > { %v534_v7 = vmul.f32 1.442695, %v531_v4  ;;  %v373_v8 = vpop.permute.xlu1 %372 }
  0xb0   : > { %v399_v9 = vadd.f32 %v397_v5, %v381_v6  ;;  %v380_v12 = vsub.f32 %v373_v8, %v378_v0 }
  0xb1   : > { %v1030_v10 = vpop.eup %1029  ;;  %1031 = vpow2.f32 %v534_v7 }
  0xb2   : > { %893 = vmatprep.mubr.f32.mxu1 %v1030_v10  ;;  %v401_v11 = vsub.f32 0.0, %v399_v9  ;;  %v382_v16 = vmul.f32 %v380_v12, %v380_v12 }
  0xb4   : > { %v389_v13 = vpop.permute.xlu1 %388  ;;  %v403_v14 = vmul.f32 1.442695, %v401_v11 }
  0xb5   : > { %v396_v15 = vsub.f32 %v389_v13, %v394_v58 }
  0xb6   : > { %1033 = vpow2.f32 %v403_v14 }
  0xb7   : > { %v398_v17 = vmul.f32 %v396_v15, %v396_v15 }
  0xb9   : > { %v400_v18 = vadd.f32 %v398_v17, %v382_v16 }
  0xbb   : > { %v1032_v19 = vpop.eup %1031  ;;  %v402_v20 = vsub.f32 0.0, %v400_v18 }
  0xbc   : > { %894 = vmatmul.mubr.f32.vlgmr.msra.gmra.mrb[0].mxu1 %v1032_v19 }
  0xbd   : > { %v405_v21 = vmul.f32 1.442695, %v402_v20 }
  0xbf   : > { %1035 = vpow2.f32 %v405_v21 }
  0xc0   : > { %v1034_v22 = vpop.eup %1033 }
  0xc1   : > { %858 = vmatprep.mubr.f32.mxu0 %v1034_v22 }
  0xc9   : > { %v1036_v23 = vpop.eup %1035 }
  0xca   : > { %859 = vmatmul.mubr.f32.vlgmr.msra.gmra.mrb[0].mxu0 %v1036_v23 }
 0x18f   : > { %v895_v25 = vpop.f32.mrb[0].mxu1 }
 0x190   : > { %v602_v26 = vpop.f32.mrb[1].mxu1  ;;  %615 = vrot.lane.b32.xlu1 %v895_v25, %s1120_s9 }
 0x191   : > { %613 = vrot.lane.b32.xlu0 %v602_v26, %s1120_s9 }
 0x19d   : > { %v860_v27 = vpop.f32.mrb[0].mxu0 }
 0x19e   : > { %v473_v28 = vpop.f32.mrb[1].mxu0 }
 0x202   : > { %v616_v30 = vpop.permute.xlu1 %615 }
 0x203   : > { %v621_v32 = vsel %vm619_vm1, %v860_v27, %v616_v30  ;;  %v614_v33 = vpop.permute.xlu0 %613 }
 0x204   : > { %v625_v34 = vadd.f32 %v623_v29, %v621_v32  ;;  %v620_v35 = vsel %vm619_vm1, %v473_v28, %v614_v33 }
 0x205   : > { %v624_v36 = vadd.f32 %v622_v31, %v620_v35 }
 0x206   : > { %628 = vst.msk [vmem:[#allocation2 + $0x8] sm:$0xff] %vm329_vm0, %v625_v34 }
 0x207   : > { %627 = vst.msk [vmem:[#allocation2] sm:$0xff] %vm329_vm0, %v624_v36 }
 0x20d   : > { %v633_v37 = vld [vmem:[#allocation2 + $0x8] sm:$0xff] }
 0x20e   : > { %v632_v38 = vld [vmem:[#allocation2] sm:$0xff]  ;;  %v635_v39 = vmul.f32 0.5, %v633_v37 }
 0x20f   : > { %v634_v40 = vmul.f32 0.5, %v632_v38 }
 0x210   : > { %637 = vst.msk [vmem:[%s296_s15 + $0x8] sm:$0xff] %vm329_vm0, %v635_v39 }
 0x211   : > { %636 = vst.msk [vmem:[%s296_s15] sm:$0xff] %vm329_vm0, %v634_v40 }
 0x212   : > { %1050 = shalt.err (!%p1047_p5)
}
 0x213   : > { %s1051_s10 = scalar_lea.hbm %s1266_s25, 256  ;;  %s1055_s12 = scalar_lea.hbm %s1323_s5, 512 }
 0x214   : > { %p1052_p6 = scmp.ne.s32.totalorder %s1266_s25, %s1051_s10  ;;  %p1056_p10 = scmp.lt.u32.totalorder %s1266_s25, %s1323_s5 }
 0x215   : > { %p1057_p11 = scmp.lt.u32.totalorder %s1055_s12, %s1051_s10  ;;  %p1059_p13 = scmp.lt.u32.totalorder %s1051_s10, %s1266_s25 }
 0x216   : > { %p1053_p7 = pnand %p1052_p6, %p1194_p4 }
 0x217   : > { %p1058_p12 = por %p1057_p11, %p1056_p10 }
 0x218   : > { %p1054_p9 = pneg %p1053_p7 }
 0x219   : > { %p1060_p0 = por %p1059_p13, %p1058_p12 }
 0x21b   : > { %p1061_p1 = pnand %p1060_p0, %p1054_p9 }
 0x21d   : > { %1064 = shalt.err (!%p1061_p1)
}
 0x21e   : > { %s1122_s15 = smov 128   ;;  %s1123_s17 = smov 8  }
 0x21f   : > { %960 = dma.vmem_to_hbm [thread:$0]  (%p1194_p4), %s1268_s16, 256, %s1266_s25, %s1272_s21, %s1122_s15, %s1122_s15, %s1123_s17  }
 0x220 PF: > { %p966_p2 = scmp.ge.s32.totalorder %s1115_s23, 2  ;;  %s669_s24 = sand.u32 1, %s1095_s18  }
 0x221   : > { %s670_s27 = scalar_lea.sflag [#allocation4], %s669_s24 }
 0x222   : > { %p963_p3 = pnand %p966_p2, %p1201_p8 }
 0x224   : > { %1090 = dma.done.wait (!%p963_p3), %s670_s27, 256  }
 0x225   : > { %1092 = vsyncadd (!%p963_p3), %s670_s27, 4294967040  ;;  %s18_s23 = sadd.s32 1, %s1115_s23   ;;  %s1326_s18 = smov %s1099_s19 }
 0x226   : > { %p15_p5 = scmp.ge.s32.totalorder %s18_s23, 4   ;;  %s1327_s19 = smov %s1103_s20 }
 0x227   : > { %s1328_s20 = smov %s1207_s6  ;;  %s1329_s21 = smov %s1111_s22 }
 0x228   : > { %s1330_s22 = smov %s1332_s26  ;;  %17 = sbr.rel (!%p15_p5) target bundleno = 4 (0x4), region = 89 }
 0x22f   :  { %675 = vsyncpa [#allocation4], 1 }
 0x230   :  { %677 = vsyncpa [#allocation4 + $0x1], 1 }

</bundles_post_ra>
